<compile_context>
chip_gen: v7x
topology: tpu7x:2x2x1
jax: 0.10.0
libtpu: 0.0.40
codegen_flags: <defaults>
</compile_context>

<pallas_src>
import functools

import jax
import jax.numpy as jnp
from jax import lax
from jax.experimental import pallas as pl
from jax.experimental.pallas import tpu as pltpu

ALPHA = 0.25
GAMMA = 2.0

LANES = 128
MAX_BLOCK_ROWS = 2048        # 1 MiB f32 input tile per grid step
SINGLE_TILE_MAX_ROWS = 512   # <= 64K elements -> single-dispatch fast path
MIN_TILES = 4                # >= 2 grid steps per v7x TensorCore when tiled
PAD_LOGIT = -30.0            # 0.75 * log1p(exp(-30)) * sigmoid(-30)^2 ~ 1e-39 -> 0


def _round_up(n, m):
    return ((n + m - 1) // m) * m


def _sublane_align(*dtypes):
    """Sublane multiple so each input's block divides its native (8*pack,128) tile."""
    align = 8
    for dt in dtypes:
        packing = max(1, 4 // dt.itemsize)   # f32->1, bf16->2, int8/bool->4
        align = max(align, 8 * packing)
    return align


@functools.lru_cache(maxsize=None)
def _use_vpu_reciprocal():
    """True on v7x, where 3.2 TB/s HBM outruns the single EUP slot."""
    try:
        kind = jax.devices()[0].device_kind.lower()
    except Exception:
        return False
    return ("v7" in kind) or ("7x" in kind)


def _focal_elementwise(x, t, *, alpha, gamma, use_vpu_recip):
    """Per-element sigmoid focal loss in f32 (matches the PyTorch forward)."""
    x = x.astype(jnp.float32)
    t = t.astype(jnp.float32)

    # Shared exp(-|x|) drives both the stable softplus term and the sigmoid.
    e = jnp.exp(-jnp.abs(x))
    # binary_cross_entropy_with_logits, reduction='none' (numerically stable form):
    #   ce = max(x, 0) - x*t + log1p(exp(-|x|))
    ce = jnp.maximum(x, 0.0) - x * t + jnp.log1p(e)

    # sigmoid(x) = where(x >= 0, 1, e) / (1 + e); d = 1 + e is in (1, 2].
    d = 1.0 + e
    if use_vpu_recip:
        # VPU-only reciprocal (keeps the lone EUP slot for exp/log1p on v7x):
        # linear minimax seed on (1, 2] (max rel err 1/17) + 3 Newton steps
        # -> rel err ~1.4e-10 < f32 eps, pure VALU work.
        r = (24.0 / 17.0) - (8.0 / 17.0) * d
        for _ in range(3):
            r = r * (2.0 - d * r)
    else:
        # EUP approx reciprocal + 1 Newton step; hides under HBM on v5e/v6e.
        r = pl.reciprocal(d, approx=True)
        r = r * (2.0 - d * r)
    p = jnp.where(x >= 0.0, 1.0, e) * r

    p_t = p * t + (1.0 - p) * (1.0 - t)
    q = 1.0 - p_t
    if gamma == 2.0:
        mod = q * q                      # avoid float-exponent pow (2 EUP ops + NaN risk)
    elif float(gamma).is_integer() and gamma >= 0:
        mod = jnp.ones_like(q)
        for _ in range(int(gamma)):
            mod = mod * q
    else:
        # q can dip slightly below 0 from rounding; clamp so pow doesn't NaN.
        mod = jnp.maximum(q, 0.0) ** gamma

    loss = ce * mod
    if alpha >= 0:
        alpha_t = alpha * t + (1.0 - alpha) * (1.0 - t)
        loss = alpha_t * loss
    return loss


def _focal_sum_kernel(x_ref, t_ref, out_ref, *, alpha, gamma, use_vpu_recip, inv_n):
    """Single-tile fast path: reduction + mean finished in-kernel (SMEM scalar)."""
    loss = _focal_elementwise(x_ref[...], t_ref[...], alpha=alpha, gamma=gamma,
                              use_vpu_recip=use_vpu_recip)
    out_ref[0, 0] = jnp.sum(loss) * inv_n


def _focal_partial_kernel(x_ref, t_ref, out_ref, *, alpha, gamma, use_vpu_recip,
                          block_rows, n_rows, n_tiles):
    """Writes an (8, 128) vreg-aligned partial sum of per-element losses."""
    loss = _focal_elementwise(x_ref[...], t_ref[...], alpha=alpha, gamma=gamma,
                              use_vpu_recip=use_vpu_recip)

    if n_rows % block_rows != 0:
        # Last grid step maps to a partial block; Pallas leaves its out-of-bounds
        # rows unspecified, so zero them (jnp.where is a select, so any garbage /
        # NaN computed above is simply discarded).
        rows_last = n_rows - (n_tiles - 1) * block_rows
        limit = jnp.where(pl.program_id(0) == n_tiles - 1, rows_last, block_rows)
        row = lax.broadcasted_iota(jnp.int32, loss.shape, 0)
        loss = jnp.where(row < limit, loss, 0.0)

    # Fold to one (8, 128) block with pure VPU adds (the split is along the
    # sublane-major axis at a multiple of 8 -> no retile copy); the tiny final
    # cross-lane reduce happens in the wrapper.
    out_ref[...] = loss.reshape(block_rows // 8, 8, LANES).sum(axis=0)


def focal_loss(inputs, targets, alpha=ALPHA, gamma=GAMMA):
    """Mean sigmoid focal loss over all elements (PyTorch FocalLoss.forward).

    `targets` may be any dtype (bf16 / int8 / bool recommended -- 0 and 1 are
    exact); the f32 cast happens in-kernel so the narrow dtype is what crosses HBM.
    """
    n_valid = int(inputs.size)
    x = inputs.reshape(-1)
    t = targets.reshape(-1)

    # Only the sub-128 ragged remainder is padded (<= 127 elements). PAD_LOGIT
    # with target 0 contributes ~1e-39 per padded element (flushed to 0 in f32),
    # so it cannot bias the sum; the mean divides by n_valid, not the padded count.
    rem = n_valid % LANES
    if rem:
        pad = LANES - rem
        x = jnp.pad(x, (0, pad), constant_values=PAD_LOGIT)
        t = jnp.pad(t, (0, pad), constant_values=0)

    n_rows = x.shape[0] // LANES
    x2 = x.reshape(n_rows, LANES)
    t2 = t.reshape(n_rows, LANES)

    use_vpu_recip = _use_vpu_reciprocal()

    if n_rows <= SINGLE_TILE_MAX_ROWS:
        # Single dispatch: one whole-array tile (block == full dims, so no
        # alignment rounding and no masking), mean written to a (1,1) SMEM scalar.
        kernel = functools.partial(
            _focal_sum_kernel, alpha=alpha, gamma=gamma,
            use_vpu_recip=use_vpu_recip, inv_n=1.0 / n_valid)
        out = pl.pallas_call(
            kernel,
            out_shape=jax.ShapeDtypeStruct((1, 1), jnp.float32),
            grid=(1,),
            in_specs=[
                pl.BlockSpec((n_rows, LANES), lambda i: (0, 0)),
                pl.BlockSpec((n_rows, LANES), lambda i: (0, 0)),
            ],
            out_specs=pl.BlockSpec(memory_space=pltpu.MemorySpace.SMEM),
            compiler_params=pltpu.CompilerParams(
                dimension_semantics=("arbitrary",)),
        )(x2, t2)
        return out[0, 0]

    # Multi-tile path: each grid step writes an independent (8,128) partial sum
    # so the grid axis stays "parallel" (shardable across v7x's 2 TensorCores);
    # aim for >= MIN_TILES steps, capped at MAX_BLOCK_ROWS rows per tile.
    align = _sublane_align(x2.dtype, t2.dtype)
    block_rows = min(MAX_BLOCK_ROWS, _round_up(pl.cdiv(n_rows, MIN_TILES), align))
    block_rows = max(block_rows, align)
    assert block_rows % 8 == 0  # required by the (rows//8, 8, 128) fold
    n_tiles = pl.cdiv(n_rows, block_rows)

    kernel = functools.partial(
        _focal_partial_kernel, alpha=alpha, gamma=gamma,
        use_vpu_recip=use_vpu_recip, block_rows=block_rows,
        n_rows=n_rows, n_tiles=n_tiles)

    partials = pl.pallas_call(
        kernel,
        out_shape=jax.ShapeDtypeStruct((n_tiles * 8, LANES), jnp.float32),
        grid=(n_tiles,),
        in_specs=[
            pl.BlockSpec((block_rows, LANES), lambda i: (i, 0)),
            pl.BlockSpec((block_rows, LANES), lambda i: (i, 0)),
        ],
        out_specs=pl.BlockSpec((8, LANES), lambda i: (i, 0)),
        compiler_params=pltpu.CompilerParams(
            dimension_semantics=("parallel",),
            vmem_limit_bytes=32 * 1024 * 1024),
        # NOTE(v5e): if xprof shows exposed DMA at steady state, add
        # pipeline_mode=pl.Buffered(3) to the in_specs and re-sweep.
    )(x2, t2)

    # Tiny final cross-lane reduce (n_tiles*8 x 128 f32) + mean in plain XLA;
    # negligible (~0.1%) vs. the input stream on this path.
    return jnp.sum(partials) / jnp.float32(n_valid)


def _focal_loss_ref(inputs, targets, alpha=ALPHA, gamma=GAMMA):
    x = inputs.astype(jnp.float32).reshape(-1)
    t = targets.astype(jnp.float32).reshape(-1)
    p = jax.nn.sigmoid(x)
    ce = jnp.maximum(x, 0.0) - x * t + jnp.log1p(jnp.exp(-jnp.abs(x)))
    p_t = p * t + (1 - p) * (1 - t)
    loss = ce * (1 - p_t) ** gamma
    if alpha >= 0:
        loss = (alpha * t + (1 - alpha) * (1 - t)) * loss
    return jnp.mean(loss)


if __name__ == "__main__":
    key = jax.random.PRNGKey(0)
    k1, k2, k3, k4 = jax.random.split(key, 4)

    # Shipped shape: NCHW logits; binary targets shipped in bf16 (0/1 are exact,
    # halves the target HBM stream).  2048 elems -> single-dispatch fast path.
    inputs = jax.random.normal(k1, (2, 4, 16, 16), dtype=jnp.float32)
    targets = (jax.random.uniform(k2, (2, 4, 16, 16)) > 0.5).astype(jnp.bfloat16)

    out = focal_loss(inputs, targets)
    jax.block_until_ready(out)
    ref = _focal_loss_ref(inputs, targets.astype(jnp.float32))
    assert jnp.allclose(out, ref, rtol=1e-4, atol=1e-6), (out, ref)

    # Larger, non-128-divisible shape: exercises the sub-128 tail pad, the
    # multi-tile "parallel" grid, and the last-tile row mask.
    inputs2 = jax.random.normal(k3, (2, 4, 97, 97), dtype=jnp.float32)
    targets2 = (jax.random.uniform(k4, (2, 4, 97, 97)) > 0.5).astype(jnp.bfloat16)

    out2 = focal_loss(inputs2, targets2)
    jax.block_until_ready(out2)
    ref2 = _focal_loss_ref(inputs2, targets2.astype(jnp.float32))
    assert jnp.allclose(out2, ref2, rtol=1e-4, atol=1e-6), (out2, ref2)

    print("KERNEL_OK")
</pallas_src>

<mosaic_0001>
module attributes {stable_mosaic.version = 11 : i64} {
  func.func @_focal_sum_kernel(%arg0: i32, %arg1: memref<16x128xf32, #tpu.memory_space<vmem>>, %arg2: memref<16x128xbf16, #tpu.memory_space<vmem>>, %arg3: memref<1x1xf32, #tpu.memory_space<smem>>) attributes {dimension_semantics = [#tpu.dimension_semantics<arbitrary>], iteration_bounds = array<i64: 1>, scalar_prefetch = 0 : i64, scratch_operands = 0 : i64, tpu.core_type = #tpu.core_type<tc>, window_params = [{pipeline_mode = #tpu.pipeline_mode<synchronous>, transform_indices = @transform_0, window_bounds = array<i64: 16, 128>}, {pipeline_mode = #tpu.pipeline_mode<synchronous>, transform_indices = @transform_1, window_bounds = array<i64: 16, 128>}, {transform_indices = @transform_2, window_bounds = array<i64: 1, 1>}]} {
    %c0 = arith.constant 0 : index
    %c0_0 = arith.constant 0 : index
    %0 = vector.load %arg1[%c0, %c0_0] : memref<16x128xf32, #tpu.memory_space<vmem>>, vector<16x128xf32>
    %c0_1 = arith.constant 0 : index
    %c0_2 = arith.constant 0 : index
    %1 = vector.load %arg2[%c0_1, %c0_2] : memref<16x128xbf16, #tpu.memory_space<vmem>>, vector<16x128xbf16>
    %2 = arith.extf %1 : vector<16x128xbf16> to vector<16x128xf32>
    %3 = math.absf %0 : vector<16x128xf32>
    %cst = arith.constant 0.000000e+00 : f32
    %4 = vector.broadcast %cst : f32 to vector<16x128xf32>
    %5 = arith.subf %4, %3 : vector<16x128xf32>
    %6 = math.exp %5 : vector<16x128xf32>
    %cst_3 = arith.constant 0.000000e+00 : f32
    %7 = vector.broadcast %cst_3 : f32 to vector<16x128xf32>
    %8 = arith.maximumf %0, %7 : vector<16x128xf32>
    %9 = arith.mulf %0, %2 : vector<16x128xf32>
    %10 = arith.subf %8, %9 : vector<16x128xf32>
    %11 = math.log1p %6 : vector<16x128xf32>
    %12 = arith.addf %10, %11 : vector<16x128xf32>
    %cst_4 = arith.constant 1.000000e+00 : f32
    %13 = vector.broadcast %cst_4 : f32 to vector<16x128xf32>
    %14 = arith.addf %13, %6 : vector<16x128xf32>
    %15 = tpu.reciprocal %14 {approx = true} : vector<16x128xf32> -> vector<16x128xf32>
    %16 = arith.mulf %14, %15 : vector<16x128xf32>
    %cst_5 = arith.constant 2.000000e+00 : f32
    %17 = vector.broadcast %cst_5 : f32 to vector<16x128xf32>
    %18 = arith.subf %17, %16 : vector<16x128xf32>
    %19 = arith.mulf %15, %18 : vector<16x128xf32>
    %cst_6 = arith.constant 0.000000e+00 : f32
    %20 = vector.broadcast %cst_6 : f32 to vector<16x128xf32>
    %21 = arith.cmpf oge, %0, %20 : vector<16x128xf32>
    %cst_7 = arith.constant 1.000000e+00 : f32
    %22 = vector.broadcast %cst_7 : f32 to vector<16x128xf32>
    %23 = arith.select %21, %22, %6 : vector<16x128xi1>, vector<16x128xf32>
    %24 = arith.mulf %23, %19 : vector<16x128xf32>
    %25 = arith.mulf %24, %2 : vector<16x128xf32>
    %cst_8 = arith.constant 1.000000e+00 : f32
    %26 = vector.broadcast %cst_8 : f32 to vector<16x128xf32>
    %27 = arith.subf %26, %24 : vector<16x128xf32>
    %cst_9 = arith.constant 1.000000e+00 : f32
    %28 = vector.broadcast %cst_9 : f32 to vector<16x128xf32>
    %29 = arith.subf %28, %2 : vector<16x128xf32>
    %30 = arith.mulf %27, %29 : vector<16x128xf32>
    %31 = arith.addf %25, %30 : vector<16x128xf32>
    %cst_10 = arith.constant 1.000000e+00 : f32
    %32 = vector.broadcast %cst_10 : f32 to vector<16x128xf32>
    %33 = arith.subf %32, %31 : vector<16x128xf32>
    %34 = arith.mulf %33, %33 : vector<16x128xf32>
    %35 = arith.mulf %12, %34 : vector<16x128xf32>
    %cst_11 = arith.constant 2.500000e-01 : f32
    %36 = vector.broadcast %cst_11 : f32 to vector<16x128xf32>
    %37 = arith.mulf %36, %2 : vector<16x128xf32>
    %cst_12 = arith.constant 1.000000e+00 : f32
    %38 = vector.broadcast %cst_12 : f32 to vector<16x128xf32>
    %39 = arith.subf %38, %2 : vector<16x128xf32>
    %cst_13 = arith.constant 7.500000e-01 : f32
    %40 = vector.broadcast %cst_13 : f32 to vector<16x128xf32>
    %41 = arith.mulf %40, %39 : vector<16x128xf32>
    %42 = arith.addf %37, %41 : vector<16x128xf32>
    %43 = arith.mulf %42, %35 : vector<16x128xf32>
    %44 = vector.shape_cast %43 : vector<16x128xf32> to vector<1x16x128xf32>
    %cst_14 = arith.constant dense<0.000000e+00> : vector<1xf32>
    %45 = vector.multi_reduction <add>, %44, %cst_14 [1, 2] : vector<1x16x128xf32> to vector<1xf32>
    %46 = vector.shape_cast %45 : vector<1xf32> to vector<1x1x1xf32>
    %47 = vector.extract %46[0, 0, 0] : f32 from vector<1x1x1xf32>
    %cst_15 = arith.constant 4.8828125E-4 : f32
    %48 = arith.mulf %47, %cst_15 : f32
    %c0_16 = arith.constant 0 : index
    %c0_17 = arith.constant 0 : index
    %49 = memref.load %arg3[%c0_16, %c0_17] : memref<1x1xf32, #tpu.memory_space<smem>>
    memref.store %48, %arg3[%c0_16, %c0_17] : memref<1x1xf32, #tpu.memory_space<smem>>
    return
  }
  func.func @transform_0(%arg0: i32) -> (i32, i32) {
    %c0_i32 = arith.constant 0 : i32
    %c0_i32_0 = arith.constant 0 : i32
    %c0_i32_1 = arith.constant 0 : i32
    return %c0_i32, %c0_i32_0 : i32, i32
  }
  func.func @transform_1(%arg0: i32) -> (i32, i32) {
    %c0_i32 = arith.constant 0 : i32
    %c0_i32_0 = arith.constant 0 : i32
    %c0_i32_1 = arith.constant 0 : i32
    return %c0_i32, %c0_i32_0 : i32, i32
  }
  func.func @transform_2(%arg0: i32) -> (i32, i32) {
    %c0_i32 = arith.constant 0 : i32
    %c0_i32_0 = arith.constant 0 : i32
    %c0_i32_1 = arith.constant 0 : i32
    return %c0_i32, %c0_i32_0 : i32, i32
  }
}

</mosaic_0001>

<bundles_post_ra>
// kernel: tpu_custom_call.1
= control target key start
LH: loop header
LB: loop body
LE: loop exit
PB: predicated region body
PF: predicated region fallthrough
CT: control target
= control target key end

     0   :  { %7 = vsyncpa [#allocation3], 0  ;;  %s303_s0 = inlined_call_operand.hbm [shape: f32[16,128], index: 0, kind: input, shape index: {}]   ;;  %s304_s1 = inlined_call_operand.hbm [shape: bf16[16,128], index: 1, kind: input, shape index: {}]   ;;  %s305_s2 = inlined_call_operand.hbm [shape: f32[1,1], index: 2, kind: output, shape index: {}]  }
   0x1   :  { %8 = vsyncpa [#allocation6], 0 }
   0x2   :  { %9 = vsyncpa [#allocation4], 0  ;;  %s233_s9 = smov [#allocation2]   ;;  %s173_s13 = scalar_lea.hbm %s303_s0, 256 }
   0x3   :  { %s15_s10 = sshll.u32 %s233_s9, 4  ;;  %p174_p0 = scmp.ne.s32.totalorder %s303_s0, %s173_s13  ;;  %s16_s10 = int_to_ptr.vmem [resolvable:$true] %s15_s10 }
   0x4   :  { %p177_p1 = scmp.lt.u32.totalorder %s173_s13, %s303_s0 }
   0x6   :  { %p179_p2 = pnand %p177_p1, %p174_p0 }
   0x8   :  { %182 = shalt.err (!%p179_p2)
}
   0x9   :  { %s183_s18 = scalar_lea.vmem %s16_s10, 256  ;;  %p188_p4 = scmp.lt.s32.totalorder %s16_s10, %s16_s10 }
   0xa   :  { %p184_p3 = scmp.ne.s32.totalorder %s16_s10, %s183_s18  ;;  %p189_p5 = scmp.lt.s32.totalorder %s183_s18, %s183_s18 }
   0xc   :  { %p190_p6 = por %p189_p5, %p188_p4 }
   0xe   :  { %p191_p7 = pnand %p190_p6, %p184_p3 }
  0x10   :  { %194 = shalt.err (!%p191_p7)
}
  0x11   :  { %s234_s19 = smov 128   ;;  %s235_s20 = smov 8  }
  0x12   :  { %21 = dma.hbm_to_vmem [thread:$0]  %s303_s0, 256, %s16_s10, [#allocation3], %s234_s19, %s234_s19, %s235_s20  }
  0x13   :  { %s236_s23 = smov [#allocation5]   ;;  %s195_s27 = scalar_lea.hbm %s304_s1, 128 }
  0x14   :  { %s27_s24 = sshll.u32 %s236_s23, 4  ;;  %p196_p8 = scmp.ne.s32.totalorder %s304_s1, %s195_s27  ;;  %s28_s24 = int_to_ptr.vmem [resolvable:$true] %s27_s24 }
  0x15   :  { %p199_p9 = scmp.lt.u32.totalorder %s195_s27, %s304_s1 }
  0x17   :  { %p201_p10 = pnand %p199_p9, %p196_p8 }
  0x19   :  { %204 = shalt.err (!%p201_p10)
}
  0x1a   :  { %s205_s4 = scalar_lea.vmem %s28_s24, 128  ;;  %p210_p12 = scmp.lt.s32.totalorder %s28_s24, %s28_s24 }
  0x1b   :  { %p206_p11 = scmp.ne.s32.totalorder %s28_s24, %s205_s4  ;;  %p211_p13 = scmp.lt.s32.totalorder %s205_s4, %s205_s4 }
  0x1d   :  { %p212_p0 = por %p211_p13, %p210_p12 }
  0x1f   :  { %p213_p1 = pnand %p212_p0, %p206_p11 }
  0x21   :  { %216 = shalt.err (!%p213_p1)
}
  0x22   :  { %s237_s0 = smov 64   ;;  %s238_s5 = smov 4  }
  0x23   :  { %33 = dma.hbm_to_vmem [thread:$0]  %s304_s1, 128, %s28_s24, [#allocation6], %s237_s0, %s237_s0, %s238_s5  }
  0x24   :  { %227 = dma.done.wait [#allocation3], 256  }
  0x25   :  { %228 = vsyncadd [#allocation3], 4294967040 }
  0x26   :  { %229 = dma.done.wait [#allocation6], 128  }
  0x27   :  { %230 = vsyncadd [#allocation6], 4294967168  ;;  %v40_v0 = vld [vmem:[#allocation2] sm:$0xff]  ;;  %v41_v1 = vld [vmem:[#allocation2 + $0x8] sm:$0xff]  ;;  %s217_s11 = scalar_lea.hbm %s305_s2, 16 }
  0x28   :  { %v46_v2 = vand.u32 2147483647, %v40_v0  ;;  %v47_v3 = vand.u32 2147483647, %v41_v1  ;;  %v149_v13 = vld [vmem:[#allocation5] sm:$0xff]   ;;  %vm90_vm0 = vcmp.ge.f32.partialorder %v40_v0, 0.0  ;;  %p218_p2 = scmp.ne.s32.totalorder %s305_s2, %s217_s11  ;;  %p221_p3 = scmp.lt.u32.totalorder %s217_s11, %s305_s2 }
  0x29   :  { %vm91_vm1 = vcmp.ge.f32.partialorder %v41_v1, 0.0  ;;  %v150_v19 = vunpack.c.l.bf16 %v149_v13  ;;  %v151_v20 = vunpack.c.h.bf16 %v149_v13  ;;  %v54_v27 = vmax.f32 %v40_v0, 0.0 }
  0x2a   :  { %v48_v4 = vsub.f32 0.0, %v46_v2  ;;  %v49_v5 = vsub.f32 0.0, %v47_v3  ;;  %v55_v32 = vmax.f32 %v41_v1, 0.0  ;;  %p223_p4 = pnand %p221_p3, %p218_p2 }
  0x2b   :  { %v56_v33 = vmul.f32 %v150_v19, %v40_v0  ;;  %v57_v36 = vmul.f32 %v151_v20, %v41_v1  ;;  %v100_v38 = vsub.f32 1.0, %v150_v19  ;;  %v101_v39 = vsub.f32 1.0, %v151_v20 }
  0x2c   :  { %v50_v6 = vmul.f32 1.442695, %v48_v4  ;;  %v52_v7 = vmul.f32 1.442695, %v49_v5  ;;  %v112_v58 = vmul.f32 0.25, %v150_v19  ;;  %v113_v61 = vmul.f32 0.25, %v151_v20 }
  0x2d   :  { %v58_v51 = vsub.f32 %v54_v27, %v56_v33  ;;  %v59_v53 = vsub.f32 %v55_v32, %v57_v36  ;;  %v114_v59 = vmul.f32 0.75, %v100_v38  ;;  %v115_v62 = vmul.f32 0.75, %v101_v39 }
  0x2e   :  { %161 = vpow2.f32 %v50_v6 }
  0x2f   :  { %163 = vpow2.f32 %v52_v7  ;;  %v116_v4 = vadd.f32 %v114_v59, %v112_v58  ;;  %v117_v6 = vadd.f32 %v115_v62, %v113_v61 }
  0x38   :  { %v162_v8 = vpop.eup %161 }
  0x39   :  { %v164_v9 = vpop.eup %163  ;;  %v60_v10 = vadd.f32 1.0, %v162_v8  ;;  %v63_v14 = vmul.f32 -0.5, %v162_v8  ;;  %v66_v23 = vand.u32 2147483647, %v162_v8  ;;  %v92_v25 = vsel %vm90_vm0, 1.0, %v162_v8 }
  0x3a   :  { %v69_v11 = vadd.f32 1.0, %v164_v9  ;;  %v72_v16 = vmul.f32 -0.5, %v164_v9  ;;  %v93_v30 = vsel %vm91_vm1, 1.0, %v164_v9  ;;  %v75_v34 = vand.u32 2147483647, %v164_v9 }
  0x3b   :  { %165 = vrcp.f32 %v60_v10  ;;  %v64_v22 = vadd.f32 1.0, %v63_v14  ;;  %vm279_vm2 = vcmp.lt.f32.partialorder %v66_v23, 0.0004427343 }
  0x3c   :  { %167 = vrcp.f32 %v69_v11  ;;  %v73_v28 = vadd.f32 1.0, %v72_v16  ;;  %vm283_vm3 = vcmp.lt.f32.partialorder %v75_v34, 0.0004427343 }
  0x3d   :  { %169 = vlog2.f32 %v60_v10  ;;  %v65_v41 = vmul.f32 %v162_v8, %v64_v22 }
  0x3e   :  { %171 = vlog2.f32 %v69_v11  ;;  %v74_v45 = vmul.f32 %v164_v9, %v73_v28 }
  0x45   :  { %v166_v12 = vpop.eup %165 }
  0x46   :  { %v168_v15 = vpop.eup %167  ;;  %v84_v17 = vmul.f32 %v166_v12, %v60_v10 }
  0x47   :  { %v85_v18 = vmul.f32 %v168_v15, %v69_v11  ;;  %v170_v26 = vpop.eup %169 }
  0x48   :  { %v86_v21 = vsub.f32 2.0, %v84_v17  ;;  %v172_v31 = vpop.eup %171  ;;  %v62_v40 = vmul.f32 0.6931472, %v170_v26 }
  0x49   :  { %v87_v24 = vsub.f32 2.0, %v85_v18  ;;  %v71_v44 = vmul.f32 0.6931472, %v172_v31 }
  0x4a   :  { %v88_v29 = vmul.f32 %v166_v12, %v86_v21  ;;  %v68_v54 = vsel %vm279_vm2, %v65_v41, %v62_v40 }
  0x4b   :  { %v89_v35 = vmul.f32 %v168_v15, %v87_v24  ;;  %v77_v56 = vsel %vm283_vm3, %v74_v45, %v71_v44  ;;  %v78_v63 = vadd.f32 %v68_v54, %v58_v51 }
  0x4c   :  { %v94_v37 = vmul.f32 %v92_v25, %v88_v29  ;;  %v79_v1 = vadd.f32 %v77_v56, %v59_v53 }
  0x4d   :  { %v95_v43 = vmul.f32 %v93_v30, %v89_v35 }
  0x4e   :  { %v96_v46 = vmul.f32 %v150_v19, %v94_v37  ;;  %v98_v47 = vsub.f32 1.0, %v94_v37 }
  0x4f   :  { %v97_v49 = vmul.f32 %v151_v20, %v95_v43  ;;  %v99_v50 = vsub.f32 1.0, %v95_v43 }
  0x50   :  { %v102_v52 = vmul.f32 %v100_v38, %v98_v47 }
  0x51   :  { %v103_v55 = vmul.f32 %v101_v39, %v99_v50 }
  0x52   :  { %v104_v57 = vadd.f32 %v102_v52, %v96_v46 }
  0x53   :  { %v105_v60 = vadd.f32 %v103_v55, %v97_v49 }
  0x54   :  { %v106_v0 = vsub.f32 1.0, %v104_v57 }
  0x55   :  { %v107_v2 = vsub.f32 1.0, %v105_v60 }
  0x56   :  { %v108_v3 = vmul.f32 %v106_v0, %v106_v0 }
  0x57   :  { %v109_v5 = vmul.f32 %v107_v2, %v107_v2 }
  0x58   :  { %v110_v7 = vmul.f32 %v108_v3, %v78_v63 }
  0x59   :  { %v111_v8 = vmul.f32 %v109_v5, %v79_v1 }
  0x5a   :  { %v118_v9 = vmul.f32 %v116_v4, %v110_v7 }
  0x5b   :  { %v119_v10 = vmul.f32 %v117_v6, %v111_v8 }
  0x5d   :  { %v120_v11 = vadd.f32 %v119_v10, %v118_v9 }
  0x5f   :  { %121 = vadd.xlane.f32.xlu0 %v120_v11 }
  0xec   :  { %v122_v12 = vpop.xlane.xlu0 %121 }
  0xed   :  { %v123_v13 = vrot.slane %v122_v12, 4 }
  0xef   :  { %v124_v14 = vadd.f32 %v123_v13, %v122_v12 }
  0xf1   :  { %v125_v15 = vrot.slane %v124_v14, 2 }
  0xf3   :  { %v126_v16 = vadd.f32 %v125_v15, %v124_v14 }
  0xf5   :  { %v127_v17 = vrot.slane %v126_v16, 1 }
  0xf7   :  { %v128_v18 = vadd.f32 %v127_v17, %v126_v16 }
  0xf9   :  { %152 = vpush %v128_v18 }
 0x12a   :  { %s153_s1 = spop %152 }
 0x12b   :  { %s130_s8 = smul.f32 0.00048828125, %s153_s1 }
 0x12d   :  { %132 = sst [smem:[#allocation7]] %s130_s8 }
 0x12e   :  { %226 = shalt.err (!%p223_p4)
}
 0x12f   :  { %s239_s16 = smov [#allocation7]  }
 0x130   :  { %140 = dma.smem_to_hbm %s239_s16, 16, %s305_s2, [#allocation4]  }
 0x131   :  { %231 = dma.done.wait [#allocation4], 16  }
 0x132   :  { %232 = vsyncadd [#allocation4], 4294967280 }
 0x133   :  { %144 = sfence }
 0x134   :  { %145 = vsyncpa [#allocation3], 1 }
 0x135   :  { %146 = vsyncpa [#allocation6], 1 }
 0x136   :  { %147 = vsyncpa [#allocation4], 1 }

</bundles_post_ra>
